<compile_context>
chip_gen: v7x
topology: tpu7x:2x2x1
jax: 0.10.0
libtpu: 0.0.40
codegen_flags: <defaults>
</compile_context>

<pallas_src>
import functools

import jax
import jax.numpy as jnp
from jax.experimental import pallas as pl
from jax.experimental.pallas import tpu as pltpu


def _at_loss_kernel(fs_ref, ft_ref, out_ref, ss_ref, tt_ref, st_ref, *,
                    n_valid, b_valid, tn, tb, spatial_mask, batch_mask):
    """Grid = (batch tiles ["parallel"], spatial tiles ["arbitrary" reduction])."""
    i = pl.program_id(0)          # batch tile
    j = pl.program_id(1)          # spatial tile (innermost / reduction)
    nj = pl.num_programs(1)

    # Per-batch-tile accumulator init.
    @pl.when(j == 0)
    def _():
        ss_ref[...] = jnp.zeros_like(ss_ref)
        tt_ref[...] = jnp.zeros_like(tt_ref)
        st_ref[...] = jnp.zeros_like(st_ref)

    fs = fs_ref[...].astype(jnp.float32)          # (TB, Cs, TN)
    ft = ft_ref[...].astype(jnp.float32)          # (TB, Ct, TN)

    # Channel-sum of f^2.  (PyTorch uses mean over channels; the 1/C factor
    # cancels under the per-row L2 normalization, so sum is equivalent math.)
    a_s = jnp.sum(fs * fs, axis=1)                # (TB, TN)
    a_t = jnp.sum(ft * ft, axis=1)

    def accumulate(xs, xt):
        ss_ref[...] += jnp.sum(xs * xs, axis=-1, keepdims=True)
        tt_ref[...] += jnp.sum(xt * xt, axis=-1, keepdims=True)
        st_ref[...] += jnp.sum(xs * xt, axis=-1, keepdims=True)

    if spatial_mask:
        # Interior tiles never hold invalid lanes: mask the tail tile only.
        @pl.when(j < nj - 1)
        def _():
            accumulate(a_s, a_t)

        @pl.when(j == nj - 1)
        def _():
            col = jax.lax.broadcasted_iota(jnp.int32, a_s.shape, 1)
            valid = (j * tn + col) < n_valid
            accumulate(jnp.where(valid, a_s, 0.0), jnp.where(valid, a_t, 0.0))
    else:
        accumulate(a_s, a_t)

    # Finalize this batch tile: ||a_s/ns - a_t/nt||^2 per row.
    @pl.when(j == nj - 1)
    def _():
        # F.normalize: n = max(||a||, eps), eps = 1e-12  =>  n^2 = max(||a||^2, eps^2)
        eps2 = jnp.float32(1e-24)
        ss = ss_ref[...]
        tt = tt_ref[...]
        st = st_ref[...]
        inv_ns = jax.lax.rsqrt(jnp.maximum(ss, eps2))
        inv_nt = jax.lax.rsqrt(jnp.maximum(tt, eps2))
        # NOTE: this 2 - 2*cos form loses relative precision when student ~=
        # teacher (loss -> 0); clamp so cancellation can never go negative.
        row = (ss * inv_ns * inv_ns
               + tt * inv_nt * inv_nt
               - 2.0 * st * (inv_ns * inv_nt))      # (TB, 1)
        row = jnp.maximum(row, 0.0)
        if batch_mask:
            r = jax.lax.broadcasted_iota(jnp.int32, row.shape, 0)
            row = jnp.where((i * tb + r) < b_valid, row, 0.0)
        out_ref[...] = row[None]                    # (1, TB, 1)


def _vmem_config():
    """(tile budget for 2 inputs x 2 pipeline buffers, scoped VMEM limit)."""
    phys = 128 * 1024 * 1024
    try:
        info = pltpu.get_tpu_info()
        phys = int(getattr(info, "vmem_capacity_bytes", phys)) or phys
    except Exception:
        pass
    # v5e/v6e (128 MiB physical): 24 MiB tiles / 32 MiB limit.
    # v7x (64 MiB physical):      ~21 MiB tiles / ~29 MiB limit.
    budget = min(24 * 1024 * 1024, phys // 3)
    limit = min(budget + 8 * 1024 * 1024, phys // 2)
    return budget, limit


def _choose_tiles(B, c_total, N, itemsize, vmem_budget_bytes):
    """Pick (TB, TN).  TN preference: full N > multiple-of-128 divisor of N >
    masked-tail multiple of 128.  Non-divisor TB is allowed (tail masked)."""
    def fits(tb, tn):
        # 2 pipeline buffers per input; c_total = C_s + C_t.
        return 2 * tb * c_total * tn * itemsize <= vmem_budget_bytes

    if N <= 128 or fits(1, N):
        tn = N                                  # contiguous rows, no mask
    else:
        tn = 0
        if N % 128 == 0:
            k = N // 128
            for d in range(k, 0, -1):           # largest 128-multiple divisor
                if k % d == 0 and fits(1, 128 * d):
                    tn = 128 * d
                    break
        if tn == 0:                             # masked-tail fallback
            tn = 128
            while tn + 128 < N and fits(1, tn + 128):
                tn += 128
        # TODO(synk): if even (1, C, 128) blows the budget (huge C), tile the
        #             channel axis instead and keep the full contiguous N.

    tb = max(1, min(B, vmem_budget_bytes // (2 * c_total * tn * itemsize)))
    n_b = pl.cdiv(B, tb)
    tb = pl.cdiv(B, n_b)                        # rebalance the batch tail
    return tb, tn


def _at_loss_pair(f_s, f_t, *, vmem_budget_bytes=None, vmem_limit_bytes=None):
    """Single (f_s, f_t) attention-transfer loss via one tiled Pallas kernel."""
    B, Cs, H, W = f_s.shape
    Bt, Ct, Ht, Wt = f_t.shape
    assert (B, H, W) == (Bt, Ht, Wt), "student/teacher batch+spatial must match"
    N = H * W
    fs3 = f_s.reshape(B, Cs, N)
    ft3 = f_t.reshape(B, Ct, N)

    if vmem_budget_bytes is None or vmem_limit_bytes is None:
        budget, limit = _vmem_config()
        vmem_budget_bytes = vmem_budget_bytes or budget
        vmem_limit_bytes = vmem_limit_bytes or limit

    itemsize = max(fs3.dtype.itemsize, ft3.dtype.itemsize)
    TB, TN = _choose_tiles(B, Cs + Ct, N, itemsize, vmem_budget_bytes)

    n_b = pl.cdiv(B, TB)
    n_n = pl.cdiv(N, TN)
    spatial_mask = (N % TN) != 0
    batch_mask = (B % TB) != 0

    kernel = functools.partial(
        _at_loss_kernel, n_valid=N, b_valid=B, tn=TN, tb=TB,
        spatial_mask=spatial_mask, batch_mask=batch_mask)

    bytes_accessed = B * (Cs + Ct) * N * itemsize + n_b * TB * 4
    flops = 4 * B * (Cs + Ct) * N

    out = pl.pallas_call(
        kernel,
        out_shape=jax.ShapeDtypeStruct((n_b, TB, 1), jnp.float32),
        grid=(n_b, n_n),
        in_specs=[
            pl.BlockSpec((TB, Cs, TN), lambda i, j: (i, 0, j)),
            pl.BlockSpec((TB, Ct, TN), lambda i, j: (i, 0, j)),
        ],
        out_specs=pl.BlockSpec((1, TB, 1), lambda i, j: (i, 0, 0)),
        scratch_shapes=[
            pltpu.VMEM((TB, 1), jnp.float32),   # sum a_s^2   per batch row
            pltpu.VMEM((TB, 1), jnp.float32),   # sum a_t^2
            pltpu.VMEM((TB, 1), jnp.float32),   # sum a_s*a_t
        ],
        compiler_params=pltpu.CompilerParams(
            # Batch tiles are independent (per-tile partial outputs) ->
            # "parallel" lets v7x's two TensorCores split them; the spatial
            # axis is the streaming reduction -> "arbitrary".
            dimension_semantics=("parallel", "arbitrary"),
            vmem_limit_bytes=int(vmem_limit_bytes),
        ),
        cost_estimate=pl.CostEstimate(
            flops=flops, transcendentals=0, bytes_accessed=bytes_accessed),
    )(fs3, ft3)

    # (at_s - at_t)^2 averaged over the B*N valid elements.
    return jnp.sum(out) / jnp.float32(B * N)


def distill_loss(g_s, g_t):
    """Sum of attention-transfer losses over the list of feature-map pairs.

    g_s, g_t: lists of arrays, each of shape (B, C_i, H_i, W_i) (NCHW).
    Teacher features are detached (no-op for the forward value).
    """
    total = jnp.float32(0.0)
    for f_s, f_t in zip(g_s, g_t):
        total = total + _at_loss_pair(f_s, jax.lax.stop_gradient(f_t))
    return total


if __name__ == "__main__":
    key = jax.random.PRNGKey(0)
    ks = jax.random.split(key, 8)

    # Feature-map pairs: lane-dense (N=256), small-N (N=64 < 128 lanes), and a
    # larger one (N=2304) -- all take the full-N contiguous unmasked fast path.
    g_s = [
        jax.random.normal(ks[0], (2, 4, 16, 16), dtype=jnp.float32),
        jax.random.normal(ks[1], (2, 8, 8, 8), dtype=jnp.float32),
        jax.random.normal(ks[2], (2, 4, 48, 48), dtype=jnp.float32),
    ]
    g_t = [
        jax.random.normal(ks[3], (2, 4, 16, 16), dtype=jnp.float32),
        jax.random.normal(ks[4], (2, 8, 8, 8), dtype=jnp.float32),
        jax.random.normal(ks[5], (2, 4, 48, 48), dtype=jnp.float32),
    ]

    loss = distill_loss(g_s, g_t)
    jax.block_until_ready(loss)

    # Pure-JAX reference (non-streaming form of the same math).
    def _at_ref(f):
        Bb = f.shape[0]
        a = jnp.mean(f.astype(jnp.float32) ** 2, axis=1).reshape(Bb, -1)
        n = jnp.sqrt(jnp.sum(a * a, axis=-1, keepdims=True))
        return a / jnp.maximum(n, 1e-12)

    ref = sum(jnp.mean((_at_ref(fs) - _at_ref(ft)) ** 2)
              for fs, ft in zip(g_s, g_t))
    assert jnp.allclose(loss, ref, rtol=1e-4, atol=1e-6), (loss, ref)

    # Exercise the tiled / masked code paths with tiny forced tile budgets:
    #   * spatial-tail mask: N=400 (not a multiple of 128), TN=256 < N, TB=1
    #   * batch-tail mask:   B=3, TB=2, full-N tile
    fs_m = jax.random.normal(ks[6], (3, 4, 20, 20), dtype=jnp.float32)
    ft_m = jax.random.normal(ks[7], (3, 4, 20, 20), dtype=jnp.float32)
    ref_m = jnp.mean((_at_ref(fs_m) - _at_ref(ft_m)) ** 2)
    got_spatial = _at_loss_pair(fs_m, ft_m, vmem_budget_bytes=16 * 1024,
                                vmem_limit_bytes=32 * 1024 * 1024)
    got_batch = _at_loss_pair(fs_m, ft_m, vmem_budget_bytes=52 * 1024,
                              vmem_limit_bytes=32 * 1024 * 1024)
    jax.block_until_ready((got_spatial, got_batch))
    assert jnp.allclose(got_spatial, ref_m, rtol=1e-4, atol=1e-6), (got_spatial, ref_m)
    assert jnp.allclose(got_batch, ref_m, rtol=1e-4, atol=1e-6), (got_batch, ref_m)

    print("KERNEL_OK")
</pallas_src>

<mosaic_0001>
module attributes {stable_mosaic.version = 11 : i64} {
  func.func @_at_loss_kernel(%arg0: i32, %arg1: i32, %arg2: memref<2x4x256xf32, #tpu.memory_space<vmem>>, %arg3: memref<2x4x256xf32, #tpu.memory_space<vmem>>, %arg4: memref<1x2x1xf32, #tpu.memory_space<vmem>>, %arg5: memref<2x1xf32, #tpu.memory_space<vmem>>, %arg6: memref<2x1xf32, #tpu.memory_space<vmem>>, %arg7: memref<2x1xf32, #tpu.memory_space<vmem>>) attributes {dimension_semantics = [#tpu.dimension_semantics<parallel>, #tpu.dimension_semantics<arbitrary>], iteration_bounds = array<i64: 1, 1>, scalar_prefetch = 0 : i64, scratch_operands = 3 : i64, tpu.core_type = #tpu.core_type<tc>, window_params = [{transform_indices = @transform_0, window_bounds = array<i64: 2, 4, 256>}, {transform_indices = @transform_1, window_bounds = array<i64: 2, 4, 256>}, {transform_indices = @transform_2, window_bounds = array<i64: 1, 2, 1>}]} {
    %c0_i32 = arith.constant 0 : i32
    %0 = arith.cmpi eq, %arg1, %c0_i32 : i32
    %1 = arith.extui %0 : i1 to i32
    %c0_i32_0 = arith.constant 0 : i32
    %2 = arith.cmpi ne, %1, %c0_i32_0 : i32
    scf.if %2 {
      %cst_24 = arith.constant 0.000000e+00 : f32
      %30 = vector.broadcast %cst_24 : f32 to vector<2x1xf32>
      %c0_25 = arith.constant 0 : index
      %c0_26 = arith.constant 0 : index
      %31 = vector.load %arg5[%c0_25, %c0_26] : memref<2x1xf32, #tpu.memory_space<vmem>>, vector<2x1xf32>
      tpu.vector_store %arg5[%c0_25, %c0_26], %30 {strides = array<i32>} : memref<2x1xf32, #tpu.memory_space<vmem>>, vector<2x1xf32>,
      %cst_27 = arith.constant 0.000000e+00 : f32
      %32 = vector.broadcast %cst_27 : f32 to vector<2x1xf32>
      %c0_28 = arith.constant 0 : index
      %c0_29 = arith.constant 0 : index
      %33 = vector.load %arg6[%c0_28, %c0_29] : memref<2x1xf32, #tpu.memory_space<vmem>>, vector<2x1xf32>
      tpu.vector_store %arg6[%c0_28, %c0_29], %32 {strides = array<i32>} : memref<2x1xf32, #tpu.memory_space<vmem>>, vector<2x1xf32>,
      %cst_30 = arith.constant 0.000000e+00 : f32
      %34 = vector.broadcast %cst_30 : f32 to vector<2x1xf32>
      %c0_31 = arith.constant 0 : index
      %c0_32 = arith.constant 0 : index
      %35 = vector.load %arg7[%c0_31, %c0_32] : memref<2x1xf32, #tpu.memory_space<vmem>>, vector<2x1xf32>
      tpu.vector_store %arg7[%c0_31, %c0_32], %34 {strides = array<i32>} : memref<2x1xf32, #tpu.memory_space<vmem>>, vector<2x1xf32>,
    } else {
    }
    %c0 = arith.constant 0 : index
    %c0_1 = arith.constant 0 : index
    %c0_2 = arith.constant 0 : index
    %3 = vector.load %arg2[%c0, %c0_1, %c0_2] : memref<2x4x256xf32, #tpu.memory_space<vmem>>, vector<2x4x256xf32>
    %c0_3 = arith.constant 0 : index
    %c0_4 = arith.constant 0 : index
    %c0_5 = arith.constant 0 : index
    %4 = vector.load %arg3[%c0_3, %c0_4, %c0_5] : memref<2x4x256xf32, #tpu.memory_space<vmem>>, vector<2x4x256xf32>
    %5 = arith.mulf %3, %3 : vector<2x4x256xf32>
    %cst = arith.constant dense<0.000000e+00> : vector<2x256xf32>
    %6 = vector.multi_reduction <add>, %5, %cst [1] : vector<2x4x256xf32> to vector<2x256xf32>
    %7 = arith.mulf %4, %4 : vector<2x4x256xf32>
    %cst_6 = arith.constant dense<0.000000e+00> : vector<2x256xf32>
    %8 = vector.multi_reduction <add>, %7, %cst_6 [1] : vector<2x4x256xf32> to vector<2x256xf32>
    %c0_7 = arith.constant 0 : index
    %c0_8 = arith.constant 0 : index
    %9 = vector.load %arg5[%c0_7, %c0_8] : memref<2x1xf32, #tpu.memory_space<vmem>>, vector<2x1xf32>
    %10 = arith.mulf %6, %6 : vector<2x256xf32>
    %cst_9 = arith.constant dense<0.000000e+00> : vector<2xf32>
    %11 = vector.multi_reduction <add>, %10, %cst_9 [1] : vector<2x256xf32> to vector<2xf32>
    %12 = vector.shape_cast %11 : vector<2xf32> to vector<2x1xf32>
    %13 = arith.addf %9, %12 : vector<2x1xf32>
    %c0_10 = arith.constant 0 : index
    %c0_11 = arith.constant 0 : index
    %14 = vector.load %arg5[%c0_10, %c0_11] : memref<2x1xf32, #tpu.memory_space<vmem>>, vector<2x1xf32>
    tpu.vector_store %arg5[%c0_10, %c0_11], %13 {strides = array<i32>} : memref<2x1xf32, #tpu.memory_space<vmem>>, vector<2x1xf32>,
    %c0_12 = arith.constant 0 : index
    %c0_13 = arith.constant 0 : index
    %15 = vector.load %arg6[%c0_12, %c0_13] : memref<2x1xf32, #tpu.memory_space<vmem>>, vector<2x1xf32>
    %16 = arith.mulf %8, %8 : vector<2x256xf32>
    %cst_14 = arith.constant dense<0.000000e+00> : vector<2xf32>
    %17 = vector.multi_reduction <add>, %16, %cst_14 [1] : vector<2x256xf32> to vector<2xf32>
    %18 = vector.shape_cast %17 : vector<2xf32> to vector<2x1xf32>
    %19 = arith.addf %15, %18 : vector<2x1xf32>
    %c0_15 = arith.constant 0 : index
    %c0_16 = arith.constant 0 : index
    %20 = vector.load %arg6[%c0_15, %c0_16] : memref<2x1xf32, #tpu.memory_space<vmem>>, vector<2x1xf32>
    tpu.vector_store %arg6[%c0_15, %c0_16], %19 {strides = array<i32>} : memref<2x1xf32, #tpu.memory_space<vmem>>, vector<2x1xf32>,
    %c0_17 = arith.constant 0 : index
    %c0_18 = arith.constant 0 : index
    %21 = vector.load %arg7[%c0_17, %c0_18] : memref<2x1xf32, #tpu.memory_space<vmem>>, vector<2x1xf32>
    %22 = arith.mulf %6, %8 : vector<2x256xf32>
    %cst_19 = arith.constant dense<0.000000e+00> : vector<2xf32>
    %23 = vector.multi_reduction <add>, %22, %cst_19 [1] : vector<2x256xf32> to vector<2xf32>
    %24 = vector.shape_cast %23 : vector<2xf32> to vector<2x1xf32>
    %25 = arith.addf %21, %24 : vector<2x1xf32>
    %c0_20 = arith.constant 0 : index
    %c0_21 = arith.constant 0 : index
    %26 = vector.load %arg7[%c0_20, %c0_21] : memref<2x1xf32, #tpu.memory_space<vmem>>, vector<2x1xf32>
    tpu.vector_store %arg7[%c0_20, %c0_21], %25 {strides = array<i32>} : memref<2x1xf32, #tpu.memory_space<vmem>>, vector<2x1xf32>,
    %c0_i32_22 = arith.constant 0 : i32
    %27 = arith.cmpi eq, %arg1, %c0_i32_22 : i32
    %28 = arith.extui %27 : i1 to i32
    %c0_i32_23 = arith.constant 0 : i32
    %29 = arith.cmpi ne, %28, %c0_i32_23 : i32
    scf.if %29 {
      %c0_24 = arith.constant 0 : index
      %c0_25 = arith.constant 0 : index
      %30 = vector.load %arg5[%c0_24, %c0_25] : memref<2x1xf32, #tpu.memory_space<vmem>>, vector<2x1xf32>
      %c0_26 = arith.constant 0 : index
      %c0_27 = arith.constant 0 : index
      %31 = vector.load %arg6[%c0_26, %c0_27] : memref<2x1xf32, #tpu.memory_space<vmem>>, vector<2x1xf32>
      %c0_28 = arith.constant 0 : index
      %c0_29 = arith.constant 0 : index
      %32 = vector.load %arg7[%c0_28, %c0_29] : memref<2x1xf32, #tpu.memory_space<vmem>>, vector<2x1xf32>
      %cst_30 = arith.constant 1.000000e-24 : f32
      %33 = vector.broadcast %cst_30 : f32 to vector<2x1xf32>
      %34 = arith.maximumf %30, %33 : vector<2x1xf32>
      %35 = math.rsqrt %34 : vector<2x1xf32>
      %cst_31 = arith.constant 1.000000e-24 : f32
      %36 = vector.broadcast %cst_31 : f32 to vector<2x1xf32>
      %37 = arith.maximumf %31, %36 : vector<2x1xf32>
      %38 = math.rsqrt %37 : vector<2x1xf32>
      %39 = arith.mulf %30, %35 : vector<2x1xf32>
      %40 = arith.mulf %39, %35 : vector<2x1xf32>
      %41 = arith.mulf %31, %38 : vector<2x1xf32>
      %42 = arith.mulf %41, %38 : vector<2x1xf32>
      %43 = arith.addf %40, %42 : vector<2x1xf32>
      %cst_32 = arith.constant 2.000000e+00 : f32
      %44 = vector.broadcast %cst_32 : f32 to vector<2x1xf32>
      %45 = arith.mulf %44, %32 : vector<2x1xf32>
      %46 = arith.mulf %35, %38 : vector<2x1xf32>
      %47 = arith.mulf %45, %46 : vector<2x1xf32>
      %48 = arith.subf %43, %47 : vector<2x1xf32>
      %cst_33 = arith.constant 0.000000e+00 : f32
      %49 = vector.broadcast %cst_33 : f32 to vector<2x1xf32>
      %50 = arith.maximumf %48, %49 : vector<2x1xf32>
      %51 = vector.shape_cast %50 : vector<2x1xf32> to vector<1x2x1xf32>
      %c0_34 = arith.constant 0 : index
      %c0_35 = arith.constant 0 : index
      %c0_36 = arith.constant 0 : index
      %52 = vector.load %arg4[%c0_34, %c0_35, %c0_36] : memref<1x2x1xf32, #tpu.memory_space<vmem>>, vector<1x2x1xf32>
      tpu.vector_store %arg4[%c0_34, %c0_35, %c0_36], %51 {strides = array<i32>} : memref<1x2x1xf32, #tpu.memory_space<vmem>>, vector<1x2x1xf32>,
    } else {
    }
    return
  }
  func.func @transform_0(%arg0: i32, %arg1: i32) -> (i32, i32, i32) {
    %c0_i32 = arith.constant 0 : i32
    %c0_i32_0 = arith.constant 0 : i32
    return %arg0, %c0_i32, %arg1 : i32, i32, i32
  }
  func.func @transform_1(%arg0: i32, %arg1: i32) -> (i32, i32, i32) {
    %c0_i32 = arith.constant 0 : i32
    %c0_i32_0 = arith.constant 0 : i32
    return %arg0, %c0_i32, %arg1 : i32, i32, i32
  }
  func.func @transform_2(%arg0: i32, %arg1: i32) -> (i32, i32, i32) {
    %c0_i32 = arith.constant 0 : i32
    %c0_i32_0 = arith.constant 0 : i32
    %c0_i32_1 = arith.constant 0 : i32
    return %arg0, %c0_i32, %c0_i32_0 : i32, i32, i32
  }
}

</mosaic_0001>

<bundles_post_ra>
// kernel: tpu_custom_call.1
= control target key start
LH: loop header
LB: loop body
LE: loop exit
PB: predicated region body
PF: predicated region fallthrough
CT: control target
= control target key end

     0   :  { %7 = vsyncpa [#allocation6], 0  ;;  %s345_s0 = inlined_call_operand.hbm [shape: f32[2,4,256], index: 0, kind: input, shape index: {}]   ;;  %s346_s1 = inlined_call_operand.hbm [shape: f32[2,4,256], index: 1, kind: input, shape index: {}]   ;;  %s347_s2 = inlined_call_operand.vmem [shape: f32[1,2,1], index: 2, kind: output, shape index: {}]  }
   0x1   :  { %8 = vsyncpa [#allocation8], 0  ;;  %s271_s9 = smov [#allocation5]   ;;  %s223_s13 = scalar_lea.hbm %s345_s0, 256 }
   0x2   :  { %s14_s10 = sshll.u32 %s271_s9, 4  ;;  %p224_p0 = scmp.ne.s32.totalorder %s345_s0, %s223_s13  ;;  %s15_s10 = int_to_ptr.vmem [resolvable:$true] %s14_s10 }
   0x3   :  { %p227_p1 = scmp.lt.u32.totalorder %s223_s13, %s345_s0 }
   0x5   :  { %p229_p2 = pnand %p227_p1, %p224_p0 }
   0x7   :  { %232 = shalt.err (!%p229_p2)
}
   0x8   :  { %s233_s18 = scalar_lea.vmem %s15_s10, 256  ;;  %p238_p4 = scmp.lt.s32.totalorder %s15_s10, %s15_s10 }
   0x9   :  { %p234_p3 = scmp.ne.s32.totalorder %s15_s10, %s233_s18  ;;  %p239_p5 = scmp.lt.s32.totalorder %s233_s18, %s233_s18 }
   0xb   :  { %p240_p6 = por %p239_p5, %p238_p4 }
   0xd   :  { %p241_p7 = pnand %p240_p6, %p234_p3 }
   0xf   :  { %244 = shalt.err (!%p241_p7)
}
  0x10   :  { %s272_s19 = smov 128   ;;  %s273_s20 = smov 8  }
  0x11   :  { %20 = dma.hbm_to_vmem [thread:$0]  %s345_s0, 256, %s15_s10, [#allocation6], %s272_s19, %s272_s19, %s273_s20  }
  0x12   :  { %s274_s23 = smov [#allocation7]   ;;  %s245_s27 = scalar_lea.hbm %s346_s1, 256 }
  0x13   :  { %s26_s24 = sshll.u32 %s274_s23, 4  ;;  %p246_p8 = scmp.ne.s32.totalorder %s346_s1, %s245_s27  ;;  %s27_s24 = int_to_ptr.vmem [resolvable:$true] %s26_s24 }
  0x14   :  { %p249_p9 = scmp.lt.u32.totalorder %s245_s27, %s346_s1 }
  0x16   :  { %p251_p10 = pnand %p249_p9, %p246_p8 }
  0x18   :  { %254 = shalt.err (!%p251_p10)
}
  0x19   :  { %s255_s4 = scalar_lea.vmem %s27_s24, 256  ;;  %p260_p12 = scmp.lt.s32.totalorder %s27_s24, %s27_s24 }
  0x1a   :  { %p256_p11 = scmp.ne.s32.totalorder %s27_s24, %s255_s4  ;;  %p261_p13 = scmp.lt.s32.totalorder %s255_s4, %s255_s4 }
  0x1c   :  { %p262_p0 = por %p261_p13, %p260_p12 }
  0x1e   :  { %p263_p1 = pnand %p262_p0, %p256_p11 }
  0x20   :  { %266 = shalt.err (!%p263_p1)
}
  0x21   :  { %32 = dma.hbm_to_vmem [thread:$0]  %s346_s1, 256, %s27_s24, [#allocation8], %s272_s19, %s272_s19, %s273_s20  }
  0x22   :  { %267 = dma.done.wait [#allocation6], 256  }
  0x23   :  { %268 = vsyncadd [#allocation6], 4294967040 }
  0x24   :  { %269 = dma.done.wait [#allocation8], 256  }
  0x25   :  { %270 = vsyncadd [#allocation8], 4294967040  ;;  %vm43_vm0 = vcmask 1024   ;;  %v275_v0 = vmov 0.0   ;;  %v47_v1 = vld [vmem:[#allocation5] sm:$0xff]  ;;  %v48_v2 = vld [vmem:[#allocation5 + $0x8] sm:$0xff] }
  0x26   :  { %44 = vst.msk [vmem:[#allocation2] sm:$0x3] %vm43_vm0, %v275_v0  ;;  %45 = vst.msk [vmem:[#allocation3] sm:$0x3] %vm43_vm0, %v275_v0  ;;  %vm59_vm1 = vcmask 1043456   ;;  %v49_v3 = vld [vmem:[#allocation7] sm:$0xff]  ;;  %v51_v4 = vmul.f32 %v47_v1, %v47_v1  ;;  %v52_v5 = vmul.f32 %v48_v2, %v48_v2 }
  0x27   :  { %46 = vst.msk [vmem:[#allocation4] sm:$0x3] %vm43_vm0, %v275_v0  ;;  %v50_v6 = vld [vmem:[#allocation7 + $0x8] sm:$0xff]  ;;  %v88_v7 = vmul.f32 %v49_v3, %v49_v3  ;;  %vm133_vm2 = vcmask 1041409   ;;  %vm138_vm3 = vcmask 1041408  }
  0x28   :  { %v89_v8 = vmul.f32 %v50_v6, %v50_v6  ;;  %v55_v9 = vcombine.high %v51_v4, %v51_v4  ;;  %v56_v10 = vcombine.high %v52_v5, %v52_v5  ;;  %v60_v11 = vsel %vm59_vm1, %v51_v4, 0.0 }
  0x29   :  { %v74_v12 = vsel %vm59_vm1, %v52_v5, 0.0  ;;  %v61_v13 = vrot.slane %v60_v11, 4  ;;  %v92_v15 = vcombine.high %v88_v7, %v88_v7  ;;  %v96_v19 = vsel %vm59_vm1, %v88_v7, 0.0 }
  0x2a   :  { %v75_v14 = vrot.slane %v74_v12, 4  ;;  %v93_v16 = vcombine.high %v89_v8, %v89_v8  ;;  %v67_v17 = vsel %vm59_vm1, %v55_v9, 0.0  ;;  %v81_v18 = vsel %vm59_vm1, %v56_v10, 0.0 }
  0x2b   :  { %v110_v20 = vsel %vm59_vm1, %v89_v8, 0.0  ;;  %v62_v21 = vadd.f32 %v61_v13, %v60_v11  ;;  %v68_v22 = vrot.slane %v67_v17, 4  ;;  %v82_v24 = vrot.slane %v81_v18, 4 }
  0x2c   :  { %v76_v23 = vadd.f32 %v75_v14, %v74_v12  ;;  %v97_v25 = vrot.slane %v96_v19, 4  ;;  %v103_v26 = vsel %vm59_vm1, %v92_v15, 0.0  ;;  %v111_v27 = vrot.slane %v110_v20, 4 }
  0x2d   :  { %v117_v28 = vsel %vm59_vm1, %v93_v16, 0.0  ;;  %v63_v29 = vrot.slane %v62_v21, 2  ;;  %v69_v30 = vadd.f32 %v68_v22, %v67_v17  ;;  %v83_v32 = vadd.f32 %v82_v24, %v81_v18 }
  0x2e   :  { %v77_v31 = vrot.slane %v76_v23, 2  ;;  %v98_v33 = vadd.f32 %v97_v25, %v96_v19  ;;  %v104_v34 = vrot.slane %v103_v26, 4  ;;  %v112_v35 = vadd.f32 %v111_v27, %v110_v20 }
  0x2f   :  { %v118_v36 = vrot.slane %v117_v28, 4  ;;  %v64_v37 = vadd.f32 %v63_v29, %v62_v21  ;;  %v70_v38 = vrot.slane %v69_v30, 2  ;;  %v84_v40 = vrot.slane %v83_v32, 2 }
  0x30   :  { %v78_v39 = vadd.f32 %v77_v31, %v76_v23  ;;  %v99_v41 = vrot.slane %v98_v33, 2  ;;  %v105_v42 = vadd.f32 %v104_v34, %v103_v26  ;;  %v113_v43 = vrot.slane %v112_v35, 2 }
  0x31   :  { %v119_v44 = vadd.f32 %v118_v36, %v117_v28  ;;  %v65_v45 = vrot.slane %v64_v37, 1  ;;  %v71_v46 = vadd.f32 %v70_v38, %v69_v30  ;;  %v85_v48 = vadd.f32 %v84_v40, %v83_v32  ;;  %v124_v32 = vld [vmem:[#allocation2] sm:$0x3]  ;;  %v167_v36 = vld [vmem:[#allocation4] sm:$0x3] }
  0x32   :  { %v79_v47 = vrot.slane %v78_v39, 1  ;;  %v100_v49 = vadd.f32 %v99_v41, %v98_v33  ;;  %v106_v50 = vrot.slane %v105_v42, 2  ;;  %v114_v51 = vadd.f32 %v113_v43, %v112_v35  ;;  %v147_v35 = vld [vmem:[#allocation3] sm:$0x3] }
  0x33   :  { %v120_v52 = vrot.slane %v119_v44, 2  ;;  %v66_v53 = vadd.f32 %v65_v45, %v64_v37  ;;  %v72_v54 = vrot.slane %v71_v46, 1  ;;  %v86_v56 = vrot.slane %v85_v48, 1 }
  0x34   :  { %v80_v55 = vadd.f32 %v79_v47, %v78_v39  ;;  %v101_v57 = vrot.slane %v100_v49, 1  ;;  %v107_v58 = vadd.f32 %v106_v50, %v105_v42  ;;  %v115_v59 = vrot.slane %v114_v51, 1 }
  0x35   :  { %v121_v60 = vadd.f32 %v120_v52, %v119_v44  ;;  %v73_v61 = vadd.f32 %v72_v54, %v71_v46  ;;  %v87_v62 = vadd.f32 %v86_v56, %v85_v48  ;;  %v125_v63 = vmul.f32 %v66_v53, %v66_v53 }
  0x36   :  { %v127_v0 = vmul.f32 %v80_v55, %v80_v55  ;;  %v102_v1 = vadd.f32 %v101_v57, %v100_v49  ;;  %v108_v2 = vrot.slane %v107_v58, 1  ;;  %v116_v3 = vadd.f32 %v115_v59, %v114_v51 }
  0x37   :  { %v122_v4 = vrot.slane %v121_v60, 1  ;;  %v126_v5 = vmul.f32 %v73_v61, %v73_v61  ;;  %v128_v6 = vmul.f32 %v87_v62, %v87_v62 }
  0x38   :  { %v134_v7 = vsel %vm133_vm2, %v127_v0, %v125_v63  ;;  %v109_v9 = vadd.f32 %v108_v2, %v107_v58  ;;  %v148_v11 = vmul.f32 %v102_v1, %v102_v1  ;;  %v150_v13 = vmul.f32 %v116_v3, %v116_v3 }
  0x39   :  { %v139_v8 = vsel %vm138_vm3, %v134_v7, 0.0  ;;  %v123_v10 = vadd.f32 %v122_v4, %v121_v60  ;;  %v135_v12 = vsel %vm133_vm2, %v128_v6, %v126_v5  ;;  %v168_v14 = vmul.f32 %v102_v1, %v66_v53 }
  0x3a   :  { %v170_v15 = vmul.f32 %v116_v3, %v80_v55  ;;  %v140_v16 = vsel %vm138_vm3, %v135_v12, 0.0  ;;  %v149_v17 = vmul.f32 %v109_v9, %v109_v9  ;;  %v169_v19 = vmul.f32 %v109_v9, %v73_v61 }
  0x3b   :  { %v151_v18 = vmul.f32 %v123_v10, %v123_v10  ;;  %v141_v20 = vadd.f32 %v140_v16, %v139_v8  ;;  %v156_v21 = vsel %vm133_vm2, %v150_v13, %v148_v11  ;;  %v171_v22 = vmul.f32 %v123_v10, %v87_v62 }
  0x3c   :  { %v176_v23 = vsel %vm133_vm2, %v170_v15, %v168_v14  ;;  %v160_v25 = vsel %vm138_vm3, %v156_v21, 0.0 }
  0x3d   :  { %v157_v24 = vsel %vm133_vm2, %v151_v18, %v149_v17  ;;  %v180_v26 = vsel %vm138_vm3, %v176_v23, 0.0  ;;  %142 = vadd.xlane.f32.xlu0 %v141_v20  ;;  %v177_v28 = vsel %vm133_vm2, %v171_v22, %v169_v19 }
  0x3e   :  { %v161_v27 = vsel %vm138_vm3, %v157_v24, 0.0  ;;  %v181_v30 = vsel %vm138_vm3, %v177_v28, 0.0 }
  0x3f   :  { %v162_v29 = vadd.f32 %v161_v27, %v160_v25  ;;  %v182_v31 = vadd.f32 %v181_v30, %v180_v26 }
  0x41   :  { %163 = vadd.xlane.f32.xlu0 %v162_v29  ;;  %183 = vadd.xlane.f32.xlu1 %v182_v31 }
  0xca   :  { %v143_v33 = vpop.xlane.xlu0 %142 }
  0xcb   :  { %v144_v34 = vadd.f32 %v143_v33, %v124_v32 }
  0xcd   :  { %146 = vst.msk [vmem:[#allocation2] sm:$0x3] %vm43_vm0, %v144_v34 }
  0xce   :  { %v164_v37 = vpop.xlane.xlu0 %163  ;;  %v184_v38 = vpop.xlane.xlu1 %183 }
  0xcf   :  { %v165_v39 = vadd.f32 %v164_v37, %v147_v35  ;;  %v185_v40 = vadd.f32 %v184_v38, %v167_v36 }
  0xd1   :  { %166 = vst.msk [vmem:[#allocation3] sm:$0x3] %vm43_vm0, %v165_v39  ;;  %186 = vst.msk [vmem:[#allocation4] sm:$0x3] %vm43_vm0, %v185_v40 }
  0xd4   :  { %v190_v41 = vld [vmem:[#allocation2] sm:$0x3] }
  0xd5   :  { %v193_v42 = vmax.f32 %v190_v41, 1e-24 }
  0xd7   :  { %219 = vrsqrt.f32 %v193_v42 }
  0xd8   :  { %v191_v43 = vld [vmem:[#allocation3] sm:$0x3]  ;;  %v192_v46 = vld [vmem:[#allocation4] sm:$0x3] }
  0xd9   :  { %v195_v44 = vmax.f32 %v191_v43, 1e-24  ;;  %v202_v50 = vmul.f32 2.0, %v192_v46 }
  0xdb   :  { %221 = vrsqrt.f32 %v195_v44 }
  0xe1   :  { %v220_v45 = vpop.eup %219 }
  0xe2   :  { %v197_v47 = vmul.f32 %v220_v45, %v190_v41 }
  0xe4   :  { %v198_v52 = vmul.f32 %v220_v45, %v197_v47 }
  0xe5   :  { %v222_v48 = vpop.eup %221 }
  0xe6   :  { %v199_v49 = vmul.f32 %v222_v48, %v191_v43  ;;  %v203_v51 = vmul.f32 %v222_v48, %v220_v45 }
  0xe8   :  { %v200_v53 = vmul.f32 %v222_v48, %v199_v49  ;;  %v204_v55 = vmul.f32 %v203_v51, %v202_v50 }
  0xea   :  { %v201_v54 = vadd.f32 %v200_v53, %v198_v52 }
  0xec   :  { %v205_v56 = vsub.f32 %v201_v54, %v204_v55 }
  0xee   :  { %v206_v57 = vmax.f32 %v205_v56, 0.0 }
  0xf0   :  { %207 = vst.msk [vmem:[%s347_s2] sm:$0x3] %vm43_vm0, %v206_v57 }
  0xf1   :  { %212 = vsyncpa [#allocation6], 1 }
  0xf2   :  { %213 = vsyncpa [#allocation8], 1 }

</bundles_post_ra>
